<compile_context>
chip_gen: v5e
topology: v5e:2x2
jax: 0.10.0
libtpu: 0.0.40
codegen_flags: <defaults>
</compile_context>

<pallas_src>
import functools
import math

import jax
import jax.numpy as jnp
from jax.experimental import pallas as pl
from jax.experimental.pallas import tpu as pltpu


def _round_up(x, m):
    return ((x + m - 1) // m) * m


def _cdiv(a, b):
    return (a + b - 1) // b


def _note_encoder_kernel(idx_ref, tab_ref, out_ref, *, g, dur_col, bias_col):
    """One row-tile of the packed NoteEncoder forward.

    idx_ref : (TR, 3*g) int32  -- [tok_0..tok_{g-1} | typ_off_0.. | bitcast(dur)_0..]
    tab_ref : (g, V_tot, W)    -- per-group stacked table
                                  rows: emb*sqrt(H) ; type_emb*sqrt(H) ; dur_w ; dur_b
                                  group j's values live in columns [j*H, (j+1)*H)
    out_ref : (TR, W)          -- W is a multiple of 128 (lane-dense stores)
    """
    tr = out_ref.shape[0]
    v_tot = tab_ref.shape[1]
    cdt = tab_ref.dtype                       # selection/matmul compute dtype

    # Column iota + group-independent masks, hoisted out of the group loop.
    col = jax.lax.broadcasted_iota(jnp.int32, (tr, v_tot), 1)
    is_dur = col == dur_col
    is_bias = col == bias_col

    # Durations arrive bitcast to int32 inside the coalesced index stream.
    dur_all = pltpu.bitcast(idx_ref[:, 2 * g:3 * g], jnp.float32)   # (TR, g)

    acc = None
    for j in range(g):                         # g is small and static (<= 16)
        tok = idx_ref[:, j:j + 1]              # (TR, 1) token id
        typ = idx_ref[:, g + j:g + j + 1]      # (TR, 1) type id + n_vocab (pre-offset)
        dur = dur_all[:, j:j + 1]              # (TR, 1) f32 duration

        # Selection row: 1 at token column, 1 at type column, 1 at bias column,
        # `dur` at the dur_w column -> sel @ tab == emb*s + type*s + dur*w + b.
        hot = (col == tok) | (col == typ) | is_bias
        sel = jnp.where(is_dur, dur.astype(cdt), hot.astype(cdt))

        part = jnp.dot(sel, tab_ref[j], preferred_element_type=jnp.float32)
        acc = part if acc is None else acc + part

    out_ref[...] = acc.astype(out_ref.dtype)


def prepare_note_encoder_params(emb_table, type_emb_table, dur_w, dur_b,
                                *, table_dtype=jnp.bfloat16, max_pack=16):
    """Build the packed, pre-scaled parameter table ONCE (not per forward call).

    emb_table      : [n_vocab, H]  nn.Embedding(n_vocab, H).weight
    type_emb_table : [5, H]        nn.Embedding(5, H).weight
    dur_w          : [H]           nn.Linear(1, H).weight[:, 0]
    dur_b          : [H]           nn.Linear(1, H).bias
    """
    n_vocab, hidden = emb_table.shape
    n_types, h2 = type_emb_table.shape
    assert h2 == hidden and dur_w.shape == (hidden,) and dur_b.shape == (hidden,)

    scale = math.sqrt(hidden)

    # Lane packing: g timesteps per 128-lane-multiple output row, so the
    # [B,T,H] write is lane-dense with no padded-H slice in the wrapper.
    g = 128 // math.gcd(hidden, 128)
    if g > max_pack:
        g = 1                                  # awkward H: fall back to padded rows
    w_row = _round_up(g * hidden, 128)         # == g*hidden except in the fallback

    # Contiguously stacked "vocab": [emb ; type_emb ; dur_w ; dur_b], padded
    # ONCE to a multiple of 128 (smallest possible contraction K).
    dur_col = n_vocab + n_types
    bias_col = dur_col + 1
    v_tot = _round_up(bias_col + 1, 128)

    base = jnp.zeros((v_tot, hidden), jnp.float32)
    base = base.at[:n_vocab].set(emb_table.astype(jnp.float32) * scale)        # sqrt(H) folded
    base = base.at[n_vocab:dur_col].set(type_emb_table.astype(jnp.float32) * scale)
    base = base.at[dur_col].set(dur_w.astype(jnp.float32))
    base = base.at[bias_col].set(dur_b.astype(jnp.float32))

    tab = jnp.zeros((g, v_tot, w_row), jnp.float32)
    for j in range(g):
        tab = tab.at[j, :, j * hidden:(j + 1) * hidden].set(base)
    tab = tab.astype(table_dtype)

    return dict(tab=tab, g=g, w_row=w_row, v_tot=v_tot, hidden=hidden,
                n_vocab=n_vocab, n_types=n_types,
                dur_col=dur_col, bias_col=bias_col)


def note_encoder_forward(params, note_tokens, note_durs, note_types,
                         *, tile_rows=512, out_dtype=jnp.float32):
    """Pallas NoteEncoder forward.

    note_tokens : [B, T] int32, note_durs : [B, T] f32, note_types : [B, T] int32
    returns     : [B, T, H] out_dtype
    """
    B, T = note_tokens.shape
    g, w_row, hidden = params["g"], params["w_row"], params["hidden"]
    v_tot, tab, n_vocab = params["v_tot"], params["tab"], params["n_vocab"]

    n = B * T
    rows = _cdiv(n, g)

    # Flatten (B, T) onto one "parallel" grid axis.  Big, evenly balanced row
    # tiles amortize the ~0.35us per-step overhead; keep >= 2 steps when there
    # is enough work so v7x's two TensorCores both get a share.
    sub = max(8, 32 // jnp.dtype(out_dtype).itemsize)   # sublane granularity
    tile_cap = max(sub, min(tile_rows, _round_up(rows, sub)))
    n_steps = max(1, _cdiv(rows, tile_cap))
    if n_steps < 2 and rows > sub:
        n_steps = 2
    tile_rows = _round_up(_cdiv(rows, n_steps), sub)
    rows_pad = tile_rows * n_steps

    # Single coalesced int32 index stream per step: [tok | type+n_vocab | bitcast(dur)].
    def _as_rows(x, dtype, fill):
        x = x.reshape(n).astype(dtype)
        x = jnp.pad(x, (0, rows_pad * g - n), constant_values=fill)
        return x.reshape(rows_pad, g)

    tok = _as_rows(note_tokens, jnp.int32, 0)
    typ = _as_rows(note_types, jnp.int32, 0) + n_vocab          # pre-offset into stacked table
    dur = jax.lax.bitcast_convert_type(_as_rows(note_durs, jnp.float32, 0.0), jnp.int32)
    idx = jnp.concatenate([tok, typ, dur], axis=1)              # (rows_pad, 3g)

    kernel = functools.partial(_note_encoder_kernel, g=g,
                               dur_col=params["dur_col"],
                               bias_col=params["bias_col"])

    out = pl.pallas_call(
        kernel,
        out_shape=jax.ShapeDtypeStruct((rows_pad, w_row), out_dtype),
        grid=(n_steps,),
        in_specs=[
            pl.BlockSpec((tile_rows, 3 * g), lambda i: (i, 0)),
            # Constant index_map: table DMA'd once, stays resident in VMEM.
            pl.BlockSpec((g, v_tot, w_row), lambda i: (0, 0, 0)),
        ],
        out_specs=pl.BlockSpec((tile_rows, w_row), lambda i: (i, 0)),
        compiler_params=pltpu.CompilerParams(
            dimension_semantics=("parallel",)),
    )(idx, tab)

    if g * hidden == w_row:
        # Packed rows ARE the row-major flat [B*T, H] layout -> free reshape;
        # a slice copy only happens when padding rows were needed.
        res = out.reshape(rows_pad * g, hidden)
        if rows_pad * g != n:
            res = res[:n]
        return res.reshape(B, T, hidden)
    # Fallback for awkward H (no small lane-packing factor): padded rows.
    return out[:n, :hidden].reshape(B, T, hidden)


def reference(note_tokens, note_durs, note_types,
              emb_table, type_emb_table, dur_w, dur_b):
    H = emb_table.shape[1]
    x = emb_table[note_tokens] * math.sqrt(H)
    t = type_emb_table[note_types] * math.sqrt(H)
    d = note_durs[..., None] * dur_w[None, None, :] + dur_b[None, None, :]
    return x + t + d


if __name__ == "__main__":
    # Small deterministic shapes consistent with the module.
    B, T, H = 2, 16, 32
    N_VOCAB, N_TYPES = 48, 5          # type_emb is Embedding(5, H) in the module

    key = jax.random.PRNGKey(0)
    k0, k1, k2, k3, k4, k5, k6 = jax.random.split(key, 7)

    note_tokens = jax.random.randint(k0, (B, T), 0, N_VOCAB, dtype=jnp.int32)
    note_types = jax.random.randint(k1, (B, T), 0, N_TYPES, dtype=jnp.int32)
    note_durs = jax.random.uniform(k2, (B, T), dtype=jnp.float32,
                                   minval=0.0, maxval=4.0)

    # Parameter init mirroring the module: N(0, H^-0.5) embeddings, small Linear.
    emb_table = jax.random.normal(k3, (N_VOCAB, H), jnp.float32) * (H ** -0.5)
    type_table = jax.random.normal(k4, (N_TYPES, H), jnp.float32) * (H ** -0.5)
    dur_w = jax.random.normal(k5, (H,), jnp.float32) * 0.5
    dur_b = jax.random.normal(k6, (H,), jnp.float32) * 0.1

    x_ref = reference(note_tokens, note_durs, note_types,
                      emb_table, type_table, dur_w, dur_b)

    # f32-table path (tight parity check; only f32-MXU emulation noise ~1e-6).
    params_f32 = prepare_note_encoder_params(emb_table, type_table, dur_w, dur_b,
                                             table_dtype=jnp.float32)
    x = note_encoder_forward(params_f32, note_tokens, note_durs, note_types)
    x = jax.block_until_ready(x)
    assert x.shape == (B, T, H)
    assert jnp.allclose(x, x_ref, atol=1e-4, rtol=1e-4)

    # bf16 production path: bf16 table + bf16 selection matmul (native MXU rate)
    # and bf16 output store; accumulation stays f32 -> loose tolerance.
    params_bf16 = prepare_note_encoder_params(emb_table, type_table, dur_w, dur_b,
                                              table_dtype=jnp.bfloat16)
    x_bf16 = note_encoder_forward(params_bf16, note_tokens, note_durs, note_types,
                                  out_dtype=jnp.bfloat16)
    x_bf16 = jax.block_until_ready(x_bf16)
    assert x_bf16.shape == (B, T, H)
    assert jnp.allclose(x_bf16.astype(jnp.float32), x_ref, atol=1e-1, rtol=1e-1)

    print("KERNEL_OK")
</pallas_src>

<mosaic_0001>
module attributes {stable_mosaic.version = 11 : i64} {
  func.func @_note_encoder_kernel(%arg0: i32, %arg1: memref<8x12xi32, #tpu.memory_space<vmem>>, %arg2: memref<4x128x128xf32, #tpu.memory_space<vmem>>, %arg3: memref<8x128xf32, #tpu.memory_space<vmem>>) attributes {dimension_semantics = [#tpu.dimension_semantics<parallel>], iteration_bounds = array<i64: 1>, scalar_prefetch = 0 : i64, scratch_operands = 0 : i64, tpu.core_type = #tpu.core_type<tc>, window_params = [{transform_indices = @transform_0, window_bounds = array<i64: 8, 12>}, {pipeline_mode = #tpu.pipeline_mode<synchronous>, transform_indices = @transform_1, window_bounds = array<i64: 4, 128, 128>}, {transform_indices = @transform_2, window_bounds = array<i64: 8, 128>}]} {
    %0 = tpu.iota {dimensions = array<i32: 1>} : vector<8x128xi32>
    %c53_i32 = arith.constant 53 : i32
    %1 = vector.broadcast %c53_i32 : i32 to vector<8x128xi32>
    %2 = arith.cmpi eq, %0, %1 : vector<8x128xi32>
    %c54_i32 = arith.constant 54 : i32
    %3 = vector.broadcast %c54_i32 : i32 to vector<8x128xi32>
    %4 = arith.cmpi eq, %0, %3 : vector<8x128xi32>
    %c0 = arith.constant 0 : index
    %c8 = arith.constant 8 : index
    %5 = vector.load %arg1[%c0, %c8] : memref<8x12xi32, #tpu.memory_space<vmem>>, vector<8x4xi32>
    %6 = tpu.bitcast %5 : vector<8x4xi32> -> vector<8x4xf32>
    %c0_0 = arith.constant 0 : index
    %c0_1 = arith.constant 0 : index
    %7 = vector.load %arg1[%c0_0, %c0_1] : memref<8x12xi32, #tpu.memory_space<vmem>>, vector<8x1xi32>
    %c0_2 = arith.constant 0 : index
    %c4 = arith.constant 4 : index
    %8 = vector.load %arg1[%c0_2, %c4] : memref<8x12xi32, #tpu.memory_space<vmem>>, vector<8x1xi32>
    %9 = vector.extract_strided_slice %6 {offsets = [0, 0], sizes = [8, 1], strides = [1, 1]} : vector<8x4xf32> to vector<8x1xf32>
    %10 = vector.broadcast %7 : vector<8x1xi32> to vector<8x128xi32>
    %11 = arith.cmpi eq, %0, %10 : vector<8x128xi32>
    %12 = vector.broadcast %8 : vector<8x1xi32> to vector<8x128xi32>
    %13 = arith.cmpi eq, %0, %12 : vector<8x128xi32>
    %14 = arith.ori %11, %13 : vector<8x128xi1>
    %15 = arith.ori %14, %4 : vector<8x128xi1>
    %16 = arith.extui %15 : vector<8x128xi1> to vector<8x128xi32>
    %17 = arith.sitofp %16 : vector<8x128xi32> to vector<8x128xf32>
    %18 = vector.shape_cast %9 : vector<8x1xf32> to vector<8x1xf32>
    %19 = vector.broadcast %18 : vector<8x1xf32> to vector<8x128xf32>
    %20 = arith.select %2, %19, %17 : vector<8x128xi1>, vector<8x128xf32>
    %c0_3 = arith.constant 0 : index
    %c0_4 = arith.constant 0 : index
    %c0_5 = arith.constant 0 : index
    %21 = vector.load %arg2[%c0_3, %c0_4, %c0_5] : memref<4x128x128xf32, #tpu.memory_space<vmem>>, vector<1x128x128xf32>
    %22 = vector.shape_cast %21 : vector<1x128x128xf32> to vector<128x128xf32>
    %cst = arith.constant dense<0.000000e+00> : vector<8x128xf32>
    %23 = tpu.matmul %20, %22, %cst {dimension_numbers = #tpu.dot_dimension_numbers<[1], [0], [0], [1], [0, 0, 1, 1], [], []>} : vector<8x128xf32>, vector<128x128xf32>, vector<8x128xf32> -> vector<8x128xf32>
    %c0_6 = arith.constant 0 : index
    %c1 = arith.constant 1 : index
    %24 = vector.load %arg1[%c0_6, %c1] : memref<8x12xi32, #tpu.memory_space<vmem>>, vector<8x1xi32>
    %c0_7 = arith.constant 0 : index
    %c5 = arith.constant 5 : index
    %25 = vector.load %arg1[%c0_7, %c5] : memref<8x12xi32, #tpu.memory_space<vmem>>, vector<8x1xi32>
    %26 = vector.extract_strided_slice %6 {offsets = [0, 1], sizes = [8, 1], strides = [1, 1]} : vector<8x4xf32> to vector<8x1xf32>
    %27 = vector.broadcast %24 : vector<8x1xi32> to vector<8x128xi32>
    %28 = arith.cmpi eq, %0, %27 : vector<8x128xi32>
    %29 = vector.broadcast %25 : vector<8x1xi32> to vector<8x128xi32>
    %30 = arith.cmpi eq, %0, %29 : vector<8x128xi32>
    %31 = arith.ori %28, %30 : vector<8x128xi1>
    %32 = arith.ori %31, %4 : vector<8x128xi1>
    %33 = arith.extui %32 : vector<8x128xi1> to vector<8x128xi32>
    %34 = arith.sitofp %33 : vector<8x128xi32> to vector<8x128xf32>
    %35 = vector.shape_cast %26 : vector<8x1xf32> to vector<8x1xf32>
    %36 = vector.broadcast %35 : vector<8x1xf32> to vector<8x128xf32>
    %37 = arith.select %2, %36, %34 : vector<8x128xi1>, vector<8x128xf32>
    %c1_8 = arith.constant 1 : index
    %c0_9 = arith.constant 0 : index
    %c0_10 = arith.constant 0 : index
    %38 = vector.load %arg2[%c1_8, %c0_9, %c0_10] : memref<4x128x128xf32, #tpu.memory_space<vmem>>, vector<1x128x128xf32>
    %39 = vector.shape_cast %38 : vector<1x128x128xf32> to vector<128x128xf32>
    %cst_11 = arith.constant dense<0.000000e+00> : vector<8x128xf32>
    %40 = tpu.matmul %37, %39, %cst_11 {dimension_numbers = #tpu.dot_dimension_numbers<[1], [0], [0], [1], [0, 0, 1, 1], [], []>} : vector<8x128xf32>, vector<128x128xf32>, vector<8x128xf32> -> vector<8x128xf32>
    %41 = arith.addf %23, %40 : vector<8x128xf32>
    %c0_12 = arith.constant 0 : index
    %c2 = arith.constant 2 : index
    %42 = vector.load %arg1[%c0_12, %c2] : memref<8x12xi32, #tpu.memory_space<vmem>>, vector<8x1xi32>
    %c0_13 = arith.constant 0 : index
    %c6 = arith.constant 6 : index
    %43 = vector.load %arg1[%c0_13, %c6] : memref<8x12xi32, #tpu.memory_space<vmem>>, vector<8x1xi32>
    %44 = vector.extract_strided_slice %6 {offsets = [0, 2], sizes = [8, 1], strides = [1, 1]} : vector<8x4xf32> to vector<8x1xf32>
    %45 = vector.broadcast %42 : vector<8x1xi32> to vector<8x128xi32>
    %46 = arith.cmpi eq, %0, %45 : vector<8x128xi32>
    %47 = vector.broadcast %43 : vector<8x1xi32> to vector<8x128xi32>
    %48 = arith.cmpi eq, %0, %47 : vector<8x128xi32>
    %49 = arith.ori %46, %48 : vector<8x128xi1>
    %50 = arith.ori %49, %4 : vector<8x128xi1>
    %51 = arith.extui %50 : vector<8x128xi1> to vector<8x128xi32>
    %52 = arith.sitofp %51 : vector<8x128xi32> to vector<8x128xf32>
    %53 = vector.shape_cast %44 : vector<8x1xf32> to vector<8x1xf32>
    %54 = vector.broadcast %53 : vector<8x1xf32> to vector<8x128xf32>
    %55 = arith.select %2, %54, %52 : vector<8x128xi1>, vector<8x128xf32>
    %c2_14 = arith.constant 2 : index
    %c0_15 = arith.constant 0 : index
    %c0_16 = arith.constant 0 : index
    %56 = vector.load %arg2[%c2_14, %c0_15, %c0_16] : memref<4x128x128xf32, #tpu.memory_space<vmem>>, vector<1x128x128xf32>
    %57 = vector.shape_cast %56 : vector<1x128x128xf32> to vector<128x128xf32>
    %cst_17 = arith.constant dense<0.000000e+00> : vector<8x128xf32>
    %58 = tpu.matmul %55, %57, %cst_17 {dimension_numbers = #tpu.dot_dimension_numbers<[1], [0], [0], [1], [0, 0, 1, 1], [], []>} : vector<8x128xf32>, vector<128x128xf32>, vector<8x128xf32> -> vector<8x128xf32>
    %59 = arith.addf %41, %58 : vector<8x128xf32>
    %c0_18 = arith.constant 0 : index
    %c3 = arith.constant 3 : index
    %60 = vector.load %arg1[%c0_18, %c3] : memref<8x12xi32, #tpu.memory_space<vmem>>, vector<8x1xi32>
    %c0_19 = arith.constant 0 : index
    %c7 = arith.constant 7 : index
    %61 = vector.load %arg1[%c0_19, %c7] : memref<8x12xi32, #tpu.memory_space<vmem>>, vector<8x1xi32>
    %62 = vector.extract_strided_slice %6 {offsets = [0, 3], sizes = [8, 1], strides = [1, 1]} : vector<8x4xf32> to vector<8x1xf32>
    %63 = vector.broadcast %60 : vector<8x1xi32> to vector<8x128xi32>
    %64 = arith.cmpi eq, %0, %63 : vector<8x128xi32>
    %65 = vector.broadcast %61 : vector<8x1xi32> to vector<8x128xi32>
    %66 = arith.cmpi eq, %0, %65 : vector<8x128xi32>
    %67 = arith.ori %64, %66 : vector<8x128xi1>
    %68 = arith.ori %67, %4 : vector<8x128xi1>
    %69 = arith.extui %68 : vector<8x128xi1> to vector<8x128xi32>
    %70 = arith.sitofp %69 : vector<8x128xi32> to vector<8x128xf32>
    %71 = vector.shape_cast %62 : vector<8x1xf32> to vector<8x1xf32>
    %72 = vector.broadcast %71 : vector<8x1xf32> to vector<8x128xf32>
    %73 = arith.select %2, %72, %70 : vector<8x128xi1>, vector<8x128xf32>
    %c3_20 = arith.constant 3 : index
    %c0_21 = arith.constant 0 : index
    %c0_22 = arith.constant 0 : index
    %74 = vector.load %arg2[%c3_20, %c0_21, %c0_22] : memref<4x128x128xf32, #tpu.memory_space<vmem>>, vector<1x128x128xf32>
    %75 = vector.shape_cast %74 : vector<1x128x128xf32> to vector<128x128xf32>
    %cst_23 = arith.constant dense<0.000000e+00> : vector<8x128xf32>
    %76 = tpu.matmul %73, %75, %cst_23 {dimension_numbers = #tpu.dot_dimension_numbers<[1], [0], [0], [1], [0, 0, 1, 1], [], []>} : vector<8x128xf32>, vector<128x128xf32>, vector<8x128xf32> -> vector<8x128xf32>
    %77 = arith.addf %59, %76 : vector<8x128xf32>
    %c0_24 = arith.constant 0 : index
    %c0_25 = arith.constant 0 : index
    %78 = vector.load %arg3[%c0_24, %c0_25] : memref<8x128xf32, #tpu.memory_space<vmem>>, vector<8x128xf32>
    tpu.vector_store %arg3[%c0_24, %c0_25], %77 {strides = array<i32>} : memref<8x128xf32, #tpu.memory_space<vmem>>, vector<8x128xf32>,
    return
  }
  func.func @transform_0(%arg0: i32) -> (i32, i32) {
    %c0_i32 = arith.constant 0 : i32
    %c0_i32_0 = arith.constant 0 : i32
    return %arg0, %c0_i32 : i32, i32
  }
  func.func @transform_1(%arg0: i32) -> (i32, i32, i32) {
    %c0_i32 = arith.constant 0 : i32
    %c0_i32_0 = arith.constant 0 : i32
    %c0_i32_1 = arith.constant 0 : i32
    %c0_i32_2 = arith.constant 0 : i32
    return %c0_i32, %c0_i32_0, %c0_i32_1 : i32, i32, i32
  }
  func.func @transform_2(%arg0: i32) -> (i32, i32) {
    %c0_i32 = arith.constant 0 : i32
    %c0_i32_0 = arith.constant 0 : i32
    return %arg0, %c0_i32 : i32, i32
  }
}

</mosaic_0001>

<bundles_post_ra>
// kernel: tpu_custom_call.1
= control target key start
LH: loop header
LB: loop body
LE: loop exit
PB: predicated region body
PF: predicated region fallthrough
CT: control target
= control target key end

     0   :  { %7 = vsyncpa [#allocation3], 0  ;;  %s449_s0 = inlined_call_operand.hbm [shape: s32[8,12], index: 0, kind: input, shape index: {}]   ;;  %s450_s1 = inlined_call_operand.hbm [shape: f32[4,128,128], index: 1, kind: input, shape index: {}]   ;;  %s451_s2 = inlined_call_operand.hbm [shape: f32[8,128], index: 2, kind: output, shape index: {}]  }
   0x1   :  { %8 = vsyncpa [#allocation6], 0 }
   0x2   :  { %9 = vsyncpa [#allocation4], 0  ;;  %s15_s11 = sshll.u32 %s449_s0, 4  ;;  %s396_s12 = smov [#allocation2]   ;;  %s16_s11 = int_to_ptr.hbm [resolvable:$true] %s15_s11 }
   0x3   :  { %s17_s13 = sshll.u32 %s396_s12, 4  ;;  %s25_s16 = sshll.u32 %s450_s1, 4  ;;  %s18_s13 = int_to_ptr.vmem [resolvable:$true] %s17_s13  ;;  %s26_s16 = int_to_ptr.hbm [resolvable:$true] %s25_s16 }
   0x4   :  { %20 = dma.hbm_to_vmem [thread:$0]  %s16_s11, 128, %s18_s13, [#allocation3]  }
   0x5   :  { %s397_s17 = smov [#allocation5]   ;;  %s398_s19 = smov 128  }
   0x6   :  { %s27_s18 = sshll.u32 %s397_s17, 4  ;;  %s399_s20 = smov 8   ;;  %s28_s18 = int_to_ptr.vmem [resolvable:$true] %s27_s18 }
   0x7   :  { %33 = dma.hbm_to_vmem [thread:$0]  %s26_s16, 8192, %s28_s18, [#allocation6], %s398_s19, %s398_s19, %s399_s20  }
   0x8   :  { %390 = dma.done.wait [#allocation3], 128  }
   0x9   :  { %391 = vsyncadd [#allocation3], 4294967168 }
   0xa   :  { %392 = dma.done.wait [#allocation6], 8192  }
   0xb   :  { %393 = vsyncadd [#allocation6], 4294959104  ;;  %v400_v0 = vmov 3   ;;  %v401_v1 = vmov 2   ;;  %v402_v2 = vmov 0   ;;  %v46_v3 = vld [vmem:[#allocation2] sm:$0xff] }
   0xc   :  { %307 = vset.pattern.permute.xlu1 %v400_v0  ;;  %305 = vset.pattern.permute.xlu0 %v401_v1  ;;  %v79_v4 = vld [vmem:[#allocation5 + $0x78] sm:$0xff]  ;;  %v78_v5 = vld [vmem:[#allocation5 + $0x70] sm:$0xff]  ;;  %v77_v7 = vld [vmem:[#allocation5 + $0x68] sm:$0xff]  ;;  %v403_v8 = vmov 7   ;;  %v404_v9 = vmov 6   ;;  %v405_v10 = vmov 4  }
   0xd   :  { %309 = vset.pattern.permute.xlu2 %v402_v2  ;;  %210 = vperm.xlu1 %307, %v46_v3   ;;  %v187_v6 = vld [vmem:[#allocation5 + $0x178] sm:$0xff]  ;;  %v406_v11 = vmov 1   ;;  %v407_v12 = vmov 10   ;;  %v408_v13 = vmov 5   ;;  %v409_v14 = vmov 11   ;;  %v76_v17 = vld [vmem:[#allocation5 + $0x60] sm:$0xff] }
   0xe   :  { %155 = vperm.xlu0 %305, %v46_v3   ;;  %48 = vperm.xlu2 %309, %v46_v3   ;;  %v410_v15 = vmov 8   ;;  %v411_v16 = vmov 9   ;;  %v186_v18 = vld [vmem:[#allocation5 + $0x170] sm:$0xff]  ;;  %v75_v19 = vld [vmem:[#allocation5 + $0x58] sm:$0xff]  ;;  %v185_v20 = vld [vmem:[#allocation5 + $0x168] sm:$0xff]  ;;  %v42_v2 = vlaneseq  ;;  %s413_s0 = smov [#allocation7]  }
   0xf   :  { %134 = vmatpush.msra.mxu1 %v79_v4  ;;  %188 = vmatpush.msra.mxu2 %v187_v6  ;;  %v74_v21 = vld [vmem:[#allocation5 + $0x50] sm:$0xff]  ;;  %v184_v22 = vld [vmem:[#allocation5 + $0x160] sm:$0xff]  ;;  %v73_v23 = vld [vmem:[#allocation5 + $0x48] sm:$0xff]  ;;  %s270_s1 = sshll.u32 %s413_s0, 4  ;;  %s272_s23 = sshll.u32 %s451_s2, 4  ;;  %s271_s1 = int_to_ptr.vmem [resolvable:$true] %s270_s1  ;;  %s273_s23 = int_to_ptr.hbm [resolvable:$true] %s272_s23 }
  0x10   :  { %v183_v24 = vld [vmem:[#allocation5 + $0x158] sm:$0xff]  ;;  %v72_v25 = vld [vmem:[#allocation5 + $0x40] sm:$0xff]  ;;  %v182_v27 = vld [vmem:[#allocation5 + $0x150] sm:$0xff] }
  0x11   :  { %135 = vmatpush.msra.mxu1 %v78_v5  ;;  %189 = vmatpush.msra.mxu2 %v186_v18  ;;  %v242_v26 = vld [vmem:[#allocation5 + $0x1f8] sm:$0xff]  ;;  %v241_v29 = vld [vmem:[#allocation5 + $0x1f0] sm:$0xff]  ;;  %v181_v30 = vld [vmem:[#allocation5 + $0x148] sm:$0xff] }
  0x12   :  { %243 = vmatpush.msra.mxu3 %v242_v26  ;;  %v71_v28 = vld [vmem:[#allocation5 + $0x38] sm:$0xff]  ;;  %v70_v31 = vld [vmem:[#allocation5 + $0x30] sm:$0xff]  ;;  %v240_v32 = vld [vmem:[#allocation5 + $0x1e8] sm:$0xff] }
  0x13   :  { %136 = vmatpush.msra.mxu1 %v77_v7  ;;  %190 = vmatpush.msra.mxu2 %v185_v20  ;;  %v180_v33 = vld [vmem:[#allocation5 + $0x140] sm:$0xff]  ;;  %v69_v34 = vld [vmem:[#allocation5 + $0x28] sm:$0xff]  ;;  %v179_v36 = vld [vmem:[#allocation5 + $0x138] sm:$0xff] }
  0x14   :  { %244 = vmatpush.msra.mxu3 %v241_v29  ;;  %v239_v35 = vld [vmem:[#allocation5 + $0x1e0] sm:$0xff]  ;;  %v238_v38 = vld [vmem:[#allocation5 + $0x1d8] sm:$0xff]  ;;  %v178_v40 = vld [vmem:[#allocation5 + $0x130] sm:$0xff] }
  0x15   :  { %308 = vset.pattern.permute.xlu1 %v403_v8  ;;  %137 = vmatpush.msra.mxu1 %v76_v17  ;;  %v68_v37 = vld [vmem:[#allocation5 + $0x20] sm:$0xff]  ;;  %v113_v39 = vld [vmem:[#allocation5 + $0xf8] sm:$0xff]  ;;  %v237_v42 = vld [vmem:[#allocation5 + $0x1d0] sm:$0xff] }
  0x16   :  { %306 = vset.pattern.permute.xlu0 %v404_v9  ;;  %214 = vperm.xlu1 %308, %v46_v3   ;;  %v67_v41 = vld [vmem:[#allocation5 + $0x18] sm:$0xff]  ;;  %v112_v43 = vld [vmem:[#allocation5 + $0xf0] sm:$0xff]  ;;  %v177_v44 = vld [vmem:[#allocation5 + $0x128] sm:$0xff]  ;;  %v43_v9 = vand.u32 127, %v42_v2 }
  0x17   :  { %159 = vperm.xlu0 %306, %v46_v3   ;;  %310 = vset.pattern.permute.xlu2 %v405_v10  ;;  %v66_v46 = vld [vmem:[#allocation5 + $0x10] sm:$0xff]  ;;  %v236_v47 = vld [vmem:[#allocation5 + $0x1c8] sm:$0xff]  ;;  %v176_v49 = vld [vmem:[#allocation5 + $0x120] sm:$0xff] }
  0x18   :  { %52 = vperm.xlu2 %310, %v46_v3   ;;  %138 = vmatpush.msra.mxu1 %v75_v19  ;;  %v111_v48 = vld [vmem:[#allocation5 + $0xe8] sm:$0xff]  ;;  %v235_v51 = vld [vmem:[#allocation5 + $0x1c0] sm:$0xff]  ;;  %v175_v53 = vld [vmem:[#allocation5 + $0x118] sm:$0xff]  ;;  %vm45_vm2 = vcmp.eq.s32.totalorder %v43_v9, 54  ;;  %vm44_vm5 = vcmp.eq.s32.totalorder %v43_v9, 53  ;;  %v412_v19 = vmov 0.0  }
  0x19   :  { %191 = vmatpush.msra.mxu2 %v184_v22  ;;  %245 = vmatpush.msra.mxu3 %v240_v32  ;;  %v65_v50 = vld [vmem:[#allocation5 + $0x8] sm:$0xff]  ;;  %v110_v52 = vld [vmem:[#allocation5 + $0xe0] sm:$0xff]  ;;  %v234_v55 = vld [vmem:[#allocation5 + $0x1b8] sm:$0xff] }
  0x1a   :  { %139 = vmatpush.msra.mxu1 %v74_v21  ;;  %114 = vmatpush.msra.mxu0 %v113_v39  ;;  %v64_v54 = vld [vmem:[#allocation5] sm:$0xff]  ;;  %v109_v56 = vld [vmem:[#allocation5 + $0xd8] sm:$0xff]  ;;  %v174_v57 = vld [vmem:[#allocation5 + $0x110] sm:$0xff] }
  0x1b   :  { %192 = vmatpush.msra.mxu2 %v183_v24  ;;  %246 = vmatpush.msra.mxu3 %v239_v35  ;;  %v233_v58 = vld [vmem:[#allocation5 + $0x1b0] sm:$0xff]  ;;  %v173_v60 = vld [vmem:[#allocation5 + $0x108] sm:$0xff]  ;;  %v172_v63 = vld [vmem:[#allocation5 + $0x100] sm:$0xff] }
  0x1c   :  { %140 = vmatpush.msra.mxu1 %v73_v23  ;;  %115 = vmatpush.msra.mxu0 %v112_v43  ;;  %v108_v59 = vld [vmem:[#allocation5 + $0xd0] sm:$0xff]  ;;  %v232_v61 = vld [vmem:[#allocation5 + $0x1a8] sm:$0xff]  ;;  %v231_v1 = vld [vmem:[#allocation5 + $0x1a0] sm:$0xff] }
  0x1d   :  { %193 = vmatpush.msra.mxu2 %v182_v27  ;;  %247 = vmatpush.msra.mxu3 %v238_v38  ;;  %v107_v62 = vld [vmem:[#allocation5 + $0xc8] sm:$0xff]  ;;  %v230_v4 = vld [vmem:[#allocation5 + $0x198] sm:$0xff]  ;;  %v229_v6 = vld [vmem:[#allocation5 + $0x190] sm:$0xff] }
  0x1e   :  { %311 = vset.pattern.permute.xlu1 %v406_v11  ;;  %141 = vmatpush.msra.mxu1 %v72_v25  ;;  %v105_v5 = vld [vmem:[#allocation5 + $0xb8] sm:$0xff]  ;;  %v104_v7 = vld [vmem:[#allocation5 + $0xb0] sm:$0xff]  ;;  %v228_v8 = vld [vmem:[#allocation5 + $0x188] sm:$0xff] }
  0x1f   :  { %313 = vset.pattern.permute.xlu0 %v407_v12  ;;  %81 = vperm.xlu1 %311, %v46_v3   ;;  %v103_v10 = vld [vmem:[#allocation5 + $0xa8] sm:$0xff]  ;;  %v227_v11 = vld [vmem:[#allocation5 + $0x180] sm:$0xff] }
  0x20   :  { %167 = vperm.xlu0 %313, %v46_v3   ;;  %312 = vset.pattern.permute.xlu2 %v408_v13  ;;  %v102_v12 = vld [vmem:[#allocation5 + $0xa0] sm:$0xff]  ;;  %v99_v18 = vld [vmem:[#allocation5 + $0x88] sm:$0xff] }
  0x21   :  { %85 = vperm.xlu2 %312, %v46_v3   ;;  %142 = vmatpush.msra.mxu1 %v71_v28  ;;  %v98_v21 = vld [vmem:[#allocation5 + $0x80] sm:$0xff] }
  0x22   :  { %194 = vmatpush.msra.mxu2 %v181_v30  ;;  %248 = vmatpush.msra.mxu3 %v237_v42 }
  0x23   :  { %143 = vmatpush.msra.mxu1 %v70_v31  ;;  %116 = vmatpush.msra.mxu0 %v111_v48 }
  0x24   :  { %195 = vmatpush.msra.mxu2 %v180_v33  ;;  %249 = vmatpush.msra.mxu3 %v236_v47 }
  0x25   :  { %144 = vmatpush.msra.mxu1 %v69_v34  ;;  %117 = vmatpush.msra.mxu0 %v110_v52 }
  0x26   :  { %196 = vmatpush.msra.mxu2 %v179_v36  ;;  %250 = vmatpush.msra.mxu3 %v235_v51 }
  0x27   :  { %314 = vset.pattern.permute.xlu1 %v409_v14  ;;  %145 = vmatpush.msra.mxu1 %v68_v37 }
  0x28   :  { %317 = vset.pattern.permute.xlu0 %v409_v14  ;;  %222 = vperm.xlu1 %314, %v46_v3   ;;  %v101_v14 = vld [vmem:[#allocation5 + $0x98] sm:$0xff] }
  0x29   :  { %315 = vset.pattern.permute.xlu2 %v410_v15  ;;  %197 = vmatpush.msra.mxu2 %v178_v40  ;;  %v100_v15 = vld [vmem:[#allocation5 + $0x90] sm:$0xff] }
  0x2a   :  { %60 = vperm.xlu2 %315, %v46_v3   ;;  %146 = vmatpush.msra.mxu1 %v67_v41 }
  0x2b   :  { %198 = vmatpush.msra.mxu2 %v177_v44  ;;  %251 = vmatpush.msra.mxu3 %v234_v55 }
  0x2c   :  { %147 = vmatpush.msra.mxu1 %v66_v46  ;;  %118 = vmatpush.msra.mxu0 %v109_v56 }
  0x2d   :  { %199 = vmatpush.msra.mxu2 %v176_v49  ;;  %252 = vmatpush.msra.mxu3 %v233_v58 }
  0x2e   :  { %148 = vmatpush.msra.mxu1 %v65_v50  ;;  %119 = vmatpush.msra.mxu0 %v108_v59 }
  0x2f   :  { %200 = vmatpush.msra.mxu2 %v175_v53  ;;  %253 = vmatpush.msra.mxu3 %v232_v61 }
  0x30   :  { %316 = vset.pattern.permute.xlu1 %v411_v16  ;;  %149 = vmatpush.msra.mxu1 %v64_v54 }
  0x31   :  { %93 = vperm.xlu1 %316, %v46_v3   ;;  %201 = vmatpush.msra.mxu2 %v174_v57  ;;  %v106_v3 = vld [vmem:[#allocation5 + $0xc0] sm:$0xff] }
  0x32   :  { %120 = vmatpush.msra.mxu0 %v107_v62  ;;  %254 = vmatpush.msra.mxu3 %v231_v1 }
  0x33   :  { %202 = vmatpush.msra.mxu2 %v173_v60 }
  0x34   :  { %121 = vmatpush.msra.mxu0 %v106_v3  ;;  %255 = vmatpush.msra.mxu3 %v230_v4 }
  0x35   :  { %203 = vmatpush.msra.mxu2 %v172_v63 }
  0x36   :  { %122 = vmatpush.msra.mxu0 %v105_v5  ;;  %256 = vmatpush.msra.mxu3 %v229_v6 }
  0x38   :  { %123 = vmatpush.msra.mxu0 %v104_v7  ;;  %257 = vmatpush.msra.mxu3 %v228_v8 }
  0x3a   :  { %124 = vmatpush.msra.mxu0 %v103_v10  ;;  %258 = vmatpush.msra.mxu3 %v227_v11 }
  0x3c   :  { %125 = vmatpush.msra.mxu0 %v102_v12 }
  0x3e   :  { %126 = vmatpush.msra.mxu0 %v101_v14 }
  0x40   :  { %127 = vmatpush.msra.mxu0 %v100_v15 }
  0x42   :  { %128 = vmatpush.msra.mxu0 %v99_v18 }
  0x44   :  { %129 = vmatpush.msra.mxu0 %v98_v21 }
  0x68   :  { %v435_v45 = vpop.permute.xlu2 %48 }
  0x69   :  { %vm50_vm0 = vcmp.eq.s32.totalorder %v43_v9, %v435_v45 }
  0x72   :  { %v53_v0 = vpop.permute.xlu2 %52 }
  0x73   :  { %vm54_vm1 = vcmp.eq.s32.totalorder %v43_v9, %v53_v0 }
  0x74   :  { %vm55_vm3 = vmor %vm50_vm0, %vm54_vm1 }
  0x75   :  { %vm56_vm4 = vmor %vm55_vm3, %vm45_vm2 }
  0x76   :  { %v283_v20 = vsel %vm56_vm4, 1.0, %v412_v19 }
  0x7b   :  { %v86_v13 = vpop.permute.xlu2 %85 }
  0x7c   :  { %vm87_vm14 = vcmp.eq.s32.totalorder %v43_v9, %v86_v13 }
  0x7f   :  { %v211_v16 = vpop.permute.xlu1 %210 }
  0x80   :  { %v156_v17 = vpop.permute.xlu0 %155  ;;  %vm212_vm11 = vcmp.eq.s32.totalorder %v43_v9, %v211_v16 }
  0x81   :  { %vm157_vm6 = vcmp.eq.s32.totalorder %v43_v9, %v156_v17 }
  0x84   :  { %v61_v22 = vpop.permute.xlu2 %60 }
  0x85   :  { %v63_v23 = vsel %vm44_vm5, %v61_v22, %v283_v20 }
  0x86   :  { %150 = vmatmul.f32.vlgmr.msra.gmra.mxu1 %v63_v23 }
  0x88   :  { %v215_v24 = vpop.permute.xlu1 %214 }
  0x89   :  { %v160_v25 = vpop.permute.xlu0 %159  ;;  %vm216_vm10 = vcmp.eq.s32.totalorder %v43_v9, %v215_v24 }
  0x8a   :  { %vm161_vm7 = vcmp.eq.s32.totalorder %v43_v9, %v160_v25  ;;  %vm217_vm12 = vmor %vm212_vm11, %vm216_vm10 }
  0x8b   :  { %vm162_vm8 = vmor %vm157_vm6, %vm161_vm7 }
  0x8c   :  { %vm163_vm9 = vmor %vm162_vm8, %vm45_vm2 }
  0x8d   :  { %v285_v26 = vsel %vm163_vm9, 1.0, %v412_v19  ;;  %vm218_vm13 = vmor %vm217_vm12, %vm45_vm2 }
  0x8e   :  { %v286_v31 = vsel %vm218_vm13, 1.0, %v412_v19 }
  0x91   :  { %v82_v27 = vpop.permute.xlu1 %81 }
  0x92   :  { %v168_v28 = vpop.permute.xlu0 %167  ;;  %vm83_vm15 = vcmp.eq.s32.totalorder %v43_v9, %v82_v27 }
  0x93   :  { %v170_v29 = vsel %vm44_vm5, %v168_v28, %v285_v26  ;;  %vm88_vm0 = vmor %vm83_vm15, %vm87_vm14 }
  0x94   :  { %204 = vmatmul.f32.vlgmr.msra.gmra.mxu2 %v170_v29  ;;  %vm89_vm1 = vmor %vm88_vm0, %vm45_vm2 }
  0x95   :  { %v284_v34 = vsel %vm89_vm1, 1.0, %v412_v19 }
  0x9a   :  { %v223_v30 = vpop.permute.xlu1 %222 }
  0x9b   :  { %v225_v32 = vsel %vm44_vm5, %v223_v30, %v286_v31 }
  0x9c   :  { %259 = vmatmul.f32.vlgmr.msra.gmra.mxu3 %v225_v32 }
  0xa3   :  { %v94_v33 = vpop.permute.xlu1 %93 }
  0xa4   :  { %v96_v35 = vsel %vm44_vm5, %v94_v33, %v284_v34 }
  0xa5   :  { %130 = vmatmul.f32.vlgmr.msra.gmra.mxu0 %v96_v35 }
 0x103   :  { %v151_v36 = vpop.f32.mrf.mxu1 }
 0x117   :  { %v205_v39 = vpop.f32.mrf.mxu2 }
 0x11f   :  { %v260_v41 = vpop.f32.mrf.mxu3 }
 0x122   :  { %v131_v37 = vpop.f32.mrf.mxu0 }
 0x123   :  { %v152_v38 = vadd.f32 %v151_v36, %v131_v37 }
 0x125   :  { %v208_v40 = vadd.f32 %v205_v39, %v152_v38 }
 0x127   :  { %v263_v42 = vadd.f32 %v260_v41, %v208_v40 }
 0x129   :  { %264 = vst [vmem:[#allocation7] sm:$0xff] %v263_v42 }
 0x12a   :  { %275 = dma.vmem_to_hbm [thread:$0]  %s271_s1, 128, %s273_s23, [#allocation4]  }
 0x12b   :  { %394 = dma.done.wait [#allocation4], 128  }
 0x12c   :  { %395 = vsyncadd [#allocation4], 4294967168 }
 0x12d   :  { %280 = vsyncpa [#allocation3], 1 }
 0x12e   :  { %281 = vsyncpa [#allocation6], 1 }
 0x12f   :  { %282 = vsyncpa [#allocation4], 1 }

</bundles_post_ra>
